<compile_context>
chip_gen: v5e
topology: v5e:2x2
jax: 0.10.0
libtpu: 0.0.40
codegen_flags: <defaults>
</compile_context>

<pallas_src>
import jax
import jax.numpy as jnp
from jax.experimental import pallas as pl
from jax.experimental.pallas import tpu as pltpu

KH = KW = 3  # kernel size (static; module default kernel_size=3, stride=1, pad=1)


def _resnet_block_kernel(alpha_ref, xp_ref, w1_ref, b1_ref, w2_ref, b2_ref, o_ref):
    # alpha_ref: (1, 1) SMEM            shared PReLU slope (nn.PReLU default: 1 param)
    # xp_ref  : (1, H+2, (W+2)*C)       zero-padded input image, (w, c) fused in lanes
    # w1_ref  : (KH, (W+2)*C, (W+2)*C)  banded conv1 weights (BN folded, padded-width out)
    # b1_ref  : (1, (W+2)*C)            conv1 bias row (zeros at width-pad blocks)
    # w2_ref  : (KH, (W+2)*C, W*C)      banded conv2 weights (BN folded)
    # b2_ref  : (1, W*C)                conv2 bias row
    # o_ref   : (1, H, W*C)             lane-dense output
    H = o_ref.shape[1]
    WC = o_ref.shape[2]            # W * C  (lane-dense output width)
    WpC = xp_ref.shape[2]          # (W + 2) * C
    C = (WpC - WC) // 2

    alpha = alpha_ref[0, 0]
    xp = xp_ref[0]                 # (H+2, (W+2)*C)

    # ---- conv1 (+ folded BN) + PReLU, produced directly in padded-width layout
    acc1 = jnp.zeros((H, WpC), jnp.float32)
    for kh in range(KH):           # 3 MXU pushes, sublane-only row-window slices
        acc1 = acc1 + jnp.dot(xp[kh:kh + H, :], w1_ref[kh],
                              preferred_element_type=jnp.float32)
    acc1 = acc1 + b1_ref[...]                        # bias added once (hoisted)
    y1 = jnp.where(acc1 > 0, acc1, alpha * acc1)     # PReLU (VPU filler)

    # Zero-padded intermediate image (border columns are already zero by
    # construction of w1/b1; add the two zero border rows).  Stays on-core.
    zrow = jnp.zeros((1, WpC), jnp.float32)
    y1p = jnp.concatenate([zrow, y1, zrow], axis=0).astype(w2_ref.dtype)  # (H+2, WpC)

    # ---- conv2 (+ folded BN) + residual + PReLU ----
    acc2 = jnp.zeros((H, WC), jnp.float32)
    for kh in range(KH):
        acc2 = acc2 + jnp.dot(y1p[kh:kh + H, :], w2_ref[kh],
                              preferred_element_type=jnp.float32)
    acc2 = acc2 + b2_ref[...]
    acc2 = acc2 + xp[1:H + 1, C:C + WC].astype(jnp.float32)   # residual add
    out = jnp.where(acc2 > 0, acc2, alpha * acc2)             # final PReLU
    o_ref[0] = out.astype(o_ref.dtype)


# ----------------------------- wrapper helpers -----------------------------

def _fold_batchnorm(weight, bias, gamma, beta, mean, var, eps):
    """Fold inference-mode BatchNorm2d (running stats) into conv weight/bias."""
    scale = gamma / jnp.sqrt(var + eps)                       # per out-channel
    w = weight * scale[:, None, None, None]                   # (Cout, Cin, KH, KW)
    b = (bias - mean) * scale + beta
    return w, b


def _banded_conv_matrix(w_oihw, W, pad_out_width):
    """Fold the (kw, cin)->cout taps of a 3x3 'same' conv into per-kh banded
    matrices acting on a (width*channel)-fused lane axis:
        out_rows[h] = sum_kh  xpad_rows[h+kh] @ B[kh]
    B[kh] : ((W+2)*Cin, Wout*Cout), Wout = W+2 if pad_out_width (output emitted
    directly in zero-padded-width layout) else W.  Built once per call; tiny."""
    Cout, Cin, KH_, KW_ = w_oihw.shape
    w_hwio = jnp.transpose(w_oihw, (2, 3, 1, 0))              # (KH, KW, Cin, Cout)
    eye_w = jnp.eye(W, dtype=w_oihw.dtype)
    cpad = Cout if pad_out_width else 0
    mats = []
    for kh in range(KH_):
        m = None
        for kw in range(KW_):
            bd = jnp.einsum("wv,io->wivo", eye_w, w_hwio[kh, kw])
            bd = bd.reshape(W * Cin, W * Cout)                # block-diagonal
            bd = jnp.pad(bd, ((kw * Cin, (KW_ - 1 - kw) * Cin), (cpad, cpad)))
            m = bd if m is None else m + bd
        mats.append(m)
    return jnp.stack(mats)                                    # (KH, (W+2)Cin, Wout*Cout)


def resnet_block_nhwc(x_nhwc, params, eps=1e-5, compute_dtype=jnp.float32):
    """ResnetBlock forward on NHWC input. x_nhwc: (N, H, W, C) -> (N, H, W, C)."""
    (w1, b1, w2, b2, gamma, beta, mean, var, alpha) = params
    N, H, W, C = x_nhwc.shape

    # Same self.bn is applied after both convs in the PyTorch module.
    w1f, b1f = _fold_batchnorm(w1, b1, gamma, beta, mean, var, eps)
    w2f, b2f = _fold_batchnorm(w2, b2, gamma, beta, mean, var, eps)

    B1 = _banded_conv_matrix(w1f, W, pad_out_width=True).astype(compute_dtype)
    B2 = _banded_conv_matrix(w2f, W, pad_out_width=False).astype(compute_dtype)
    b1_row = jnp.concatenate(
        [jnp.zeros((C,), jnp.float32), jnp.tile(b1f, W), jnp.zeros((C,), jnp.float32)]
    ).reshape(1, (W + 2) * C)
    b2_row = jnp.tile(b2f, W).reshape(1, W * C)
    alpha2d = jnp.asarray(alpha, jnp.float32).reshape(1, 1)

    # Single layout pass: zero-pad spatially and fuse (W, C) into the lane axis.
    xp = jnp.pad(x_nhwc, ((0, 0), (1, 1), (1, 1), (0, 0)))
    xp2d = xp.reshape(N, H + 2, (W + 2) * C).astype(compute_dtype)

    out2d = pl.pallas_call(
        _resnet_block_kernel,
        out_shape=jax.ShapeDtypeStruct((N, H, W * C), x_nhwc.dtype),
        grid=(N,),
        in_specs=[
            pl.BlockSpec(memory_space=pltpu.SMEM),                           # alpha
            pl.BlockSpec((1, H + 2, (W + 2) * C), lambda n: (n, 0, 0)),      # padded x
            pl.BlockSpec((KH, (W + 2) * C, (W + 2) * C), lambda n: (0, 0, 0)),
            pl.BlockSpec((1, (W + 2) * C), lambda n: (0, 0)),
            pl.BlockSpec((KH, (W + 2) * C, W * C), lambda n: (0, 0, 0)),
            pl.BlockSpec((1, W * C), lambda n: (0, 0)),
        ],
        out_specs=pl.BlockSpec((1, H, W * C), lambda n: (n, 0, 0)),
        compiler_params=pltpu.CompilerParams(
            dimension_semantics=("parallel",)),
    )(alpha2d, xp2d, B1, b1_row, B2, b2_row)

    return out2d.reshape(N, H, W, C)


def resnet_block_nchw(x_nchw, params, eps=1e-5, compute_dtype=jnp.float32):
    """PyTorch-layout entry point: (N, C, H, W) -> (N, C, H, W)."""
    x_nhwc = jnp.transpose(x_nchw, (0, 2, 3, 1))
    out = resnet_block_nhwc(x_nhwc, params, eps, compute_dtype)
    return jnp.transpose(out, (0, 3, 1, 2))


# ----------------------------- pure-JAX reference -----------------------------

def reference_forward(x, params, eps=1e-5):
    (w1, b1, w2, b2, gamma, beta, mean, var, alpha) = params

    def conv(y, w, b):
        out = jax.lax.conv_general_dilated(
            y, w, window_strides=(1, 1), padding=((1, 1), (1, 1)),
            dimension_numbers=("NCHW", "OIHW", "NCHW"))
        return out + b.reshape(1, -1, 1, 1)

    def bn(y):
        s = (gamma / jnp.sqrt(var + eps)).reshape(1, -1, 1, 1)
        return (y - mean.reshape(1, -1, 1, 1)) * s + beta.reshape(1, -1, 1, 1)

    def act(y):
        return jnp.where(y > 0, y, alpha * y)

    out = act(bn(conv(x, w1, b1)))
    out = bn(conv(out, w2, b2))
    out = out + x                     # residual
    return act(out)


if __name__ == "__main__":
    key = jax.random.PRNGKey(0)
    ks = jax.random.split(key, 8)

    N, C, H, W = 2, 8, 16, 16         # num_filter=8 -> W*C = 128 (lane-dense)

    x = jax.random.normal(ks[0], (N, C, H, W), dtype=jnp.float32)
    # Deterministic synthetic parameters (shapes per nn.Conv2d / nn.BatchNorm2d / nn.PReLU).
    w1 = jax.random.normal(ks[1], (C, C, KH, KW), jnp.float32) * 0.1
    b1 = jax.random.normal(ks[2], (C,), jnp.float32) * 0.1
    w2 = jax.random.normal(ks[3], (C, C, KH, KW), jnp.float32) * 0.1
    b2 = jax.random.normal(ks[4], (C,), jnp.float32) * 0.1
    gamma = 1.0 + 0.1 * jax.random.normal(ks[5], (C,), jnp.float32)
    beta = 0.1 * jax.random.normal(ks[6], (C,), jnp.float32)
    mean = 0.1 * jax.random.normal(ks[7], (C,), jnp.float32)
    var = jnp.linspace(0.5, 1.5, C).astype(jnp.float32)   # positive running var
    alpha = jnp.float32(0.25)                             # nn.PReLU default init

    params = (w1, b1, w2, b2, gamma, beta, mean, var, alpha)

    fwd_f32 = jax.jit(lambda xx: resnet_block_nchw(xx, params))
    fwd_bf16 = jax.jit(lambda xx: resnet_block_nchw(xx, params,
                                                    compute_dtype=jnp.bfloat16))

    out = jax.block_until_ready(fwd_f32(x))
    ref = reference_forward(x, params)
    assert out.shape == (N, C, H, W)
    assert jnp.allclose(out, ref, atol=2e-3, rtol=2e-3), "f32 mismatch vs reference"

    # bf16 compute path (recommended for v6e/v7x): looser tolerance.
    out_bf16 = jax.block_until_ready(fwd_bf16(x))
    assert jnp.allclose(out_bf16, ref, atol=6e-2, rtol=6e-2), "bf16 mismatch vs reference"

    print("KERNEL_OK")
</pallas_src>

<mosaic_0001>
module attributes {stable_mosaic.version = 11 : i64} {
  func.func @_resnet_block_kernel(%arg0: i32, %arg1: memref<1x1xf32, #tpu.memory_space<smem>>, %arg2: memref<1x18x144xf32, #tpu.memory_space<vmem>>, %arg3: memref<3x144x144xf32, #tpu.memory_space<vmem>>, %arg4: memref<1x144xf32, #tpu.memory_space<vmem>>, %arg5: memref<3x144x128xf32, #tpu.memory_space<vmem>>, %arg6: memref<1x128xf32, #tpu.memory_space<vmem>>, %arg7: memref<1x16x128xf32, #tpu.memory_space<vmem>>) attributes {dimension_semantics = [#tpu.dimension_semantics<parallel>], iteration_bounds = array<i64: 2>, scalar_prefetch = 0 : i64, scratch_operands = 0 : i64, tpu.core_type = #tpu.core_type<tc>, window_params = [{transform_indices = @transform_0, window_bounds = array<i64: 1, 1>}, {transform_indices = @transform_1, window_bounds = array<i64: 1, 18, 144>}, {pipeline_mode = #tpu.pipeline_mode<synchronous>, transform_indices = @transform_2, window_bounds = array<i64: 3, 144, 144>}, {pipeline_mode = #tpu.pipeline_mode<synchronous>, transform_indices = @transform_3, window_bounds = array<i64: 1, 144>}, {pipeline_mode = #tpu.pipeline_mode<synchronous>, transform_indices = @transform_4, window_bounds = array<i64: 3, 144, 128>}, {pipeline_mode = #tpu.pipeline_mode<synchronous>, transform_indices = @transform_5, window_bounds = array<i64: 1, 128>}, {transform_indices = @transform_6, window_bounds = array<i64: 1, 16, 128>}]} {
    %c0 = arith.constant 0 : index
    %c0_0 = arith.constant 0 : index
    %0 = memref.load %arg1[%c0, %c0_0] : memref<1x1xf32, #tpu.memory_space<smem>>
    %c0_1 = arith.constant 0 : index
    %c0_2 = arith.constant 0 : index
    %c0_3 = arith.constant 0 : index
    %1 = vector.load %arg2[%c0_1, %c0_2, %c0_3] : memref<1x18x144xf32, #tpu.memory_space<vmem>>, vector<1x18x144xf32>
    %2 = vector.shape_cast %1 : vector<1x18x144xf32> to vector<18x144xf32>
    %cst = arith.constant 0.000000e+00 : f32
    %3 = vector.broadcast %cst : f32 to vector<16x144xf32>
    %4 = vector.extract_strided_slice %2 {offsets = [0, 0], sizes = [16, 144], strides = [1, 1]} : vector<18x144xf32> to vector<16x144xf32>
    %c0_4 = arith.constant 0 : index
    %c0_5 = arith.constant 0 : index
    %c0_6 = arith.constant 0 : index
    %5 = vector.load %arg3[%c0_4, %c0_5, %c0_6] : memref<3x144x144xf32, #tpu.memory_space<vmem>>, vector<1x144x144xf32>
    %6 = vector.shape_cast %5 : vector<1x144x144xf32> to vector<144x144xf32>
    %cst_7 = arith.constant dense<0.000000e+00> : vector<16x144xf32>
    %7 = tpu.matmul %4, %6, %cst_7 {dimension_numbers = #tpu.dot_dimension_numbers<[1], [0], [0], [1], [0, 0, 1, 1], [], []>} : vector<16x144xf32>, vector<144x144xf32>, vector<16x144xf32> -> vector<16x144xf32>
    %8 = arith.addf %3, %7 : vector<16x144xf32>
    %9 = vector.extract_strided_slice %2 {offsets = [1, 0], sizes = [16, 144], strides = [1, 1]} : vector<18x144xf32> to vector<16x144xf32>
    %c1 = arith.constant 1 : index
    %c0_8 = arith.constant 0 : index
    %c0_9 = arith.constant 0 : index
    %10 = vector.load %arg3[%c1, %c0_8, %c0_9] : memref<3x144x144xf32, #tpu.memory_space<vmem>>, vector<1x144x144xf32>
    %11 = vector.shape_cast %10 : vector<1x144x144xf32> to vector<144x144xf32>
    %cst_10 = arith.constant dense<0.000000e+00> : vector<16x144xf32>
    %12 = tpu.matmul %9, %11, %cst_10 {dimension_numbers = #tpu.dot_dimension_numbers<[1], [0], [0], [1], [0, 0, 1, 1], [], []>} : vector<16x144xf32>, vector<144x144xf32>, vector<16x144xf32> -> vector<16x144xf32>
    %13 = arith.addf %8, %12 : vector<16x144xf32>
    %14 = vector.extract_strided_slice %2 {offsets = [2, 0], sizes = [16, 144], strides = [1, 1]} : vector<18x144xf32> to vector<16x144xf32>
    %c2 = arith.constant 2 : index
    %c0_11 = arith.constant 0 : index
    %c0_12 = arith.constant 0 : index
    %15 = vector.load %arg3[%c2, %c0_11, %c0_12] : memref<3x144x144xf32, #tpu.memory_space<vmem>>, vector<1x144x144xf32>
    %16 = vector.shape_cast %15 : vector<1x144x144xf32> to vector<144x144xf32>
    %cst_13 = arith.constant dense<0.000000e+00> : vector<16x144xf32>
    %17 = tpu.matmul %14, %16, %cst_13 {dimension_numbers = #tpu.dot_dimension_numbers<[1], [0], [0], [1], [0, 0, 1, 1], [], []>} : vector<16x144xf32>, vector<144x144xf32>, vector<16x144xf32> -> vector<16x144xf32>
    %18 = arith.addf %13, %17 : vector<16x144xf32>
    %c0_14 = arith.constant 0 : index
    %c0_15 = arith.constant 0 : index
    %19 = vector.load %arg4[%c0_14, %c0_15] : memref<1x144xf32, #tpu.memory_space<vmem>>, vector<1x144xf32>
    %20 = vector.broadcast %19 : vector<1x144xf32> to vector<16x144xf32>
    %21 = arith.addf %18, %20 : vector<16x144xf32>
    %cst_16 = arith.constant 0.000000e+00 : f32
    %22 = vector.broadcast %cst_16 : f32 to vector<16x144xf32>
    %23 = arith.cmpf ogt, %21, %22 : vector<16x144xf32>
    %24 = vector.broadcast %0 : f32 to vector<16x144xf32>
    %25 = arith.mulf %24, %21 : vector<16x144xf32>
    %26 = arith.select %23, %21, %25 : vector<16x144xi1>, vector<16x144xf32>
    %cst_17 = arith.constant 0.000000e+00 : f32
    %27 = vector.broadcast %cst_17 : f32 to vector<1x144xf32>
    %28 = tpu.concatenate %27, %26, %27 in 0 : vector<1x144xf32>, vector<16x144xf32>, vector<1x144xf32> -> vector<18x144xf32>
    %cst_18 = arith.constant 0.000000e+00 : f32
    %29 = vector.broadcast %cst_18 : f32 to vector<16x128xf32>
    %30 = vector.extract_strided_slice %28 {offsets = [0, 0], sizes = [16, 144], strides = [1, 1]} : vector<18x144xf32> to vector<16x144xf32>
    %c0_19 = arith.constant 0 : index
    %c0_20 = arith.constant 0 : index
    %c0_21 = arith.constant 0 : index
    %31 = vector.load %arg5[%c0_19, %c0_20, %c0_21] : memref<3x144x128xf32, #tpu.memory_space<vmem>>, vector<1x144x128xf32>
    %32 = vector.shape_cast %31 : vector<1x144x128xf32> to vector<144x128xf32>
    %cst_22 = arith.constant dense<0.000000e+00> : vector<16x128xf32>
    %33 = tpu.matmul %30, %32, %cst_22 {dimension_numbers = #tpu.dot_dimension_numbers<[1], [0], [0], [1], [0, 0, 1, 1], [], []>} : vector<16x144xf32>, vector<144x128xf32>, vector<16x128xf32> -> vector<16x128xf32>
    %34 = arith.addf %29, %33 : vector<16x128xf32>
    %35 = vector.extract_strided_slice %28 {offsets = [1, 0], sizes = [16, 144], strides = [1, 1]} : vector<18x144xf32> to vector<16x144xf32>
    %c1_23 = arith.constant 1 : index
    %c0_24 = arith.constant 0 : index
    %c0_25 = arith.constant 0 : index
    %36 = vector.load %arg5[%c1_23, %c0_24, %c0_25] : memref<3x144x128xf32, #tpu.memory_space<vmem>>, vector<1x144x128xf32>
    %37 = vector.shape_cast %36 : vector<1x144x128xf32> to vector<144x128xf32>
    %cst_26 = arith.constant dense<0.000000e+00> : vector<16x128xf32>
    %38 = tpu.matmul %35, %37, %cst_26 {dimension_numbers = #tpu.dot_dimension_numbers<[1], [0], [0], [1], [0, 0, 1, 1], [], []>} : vector<16x144xf32>, vector<144x128xf32>, vector<16x128xf32> -> vector<16x128xf32>
    %39 = arith.addf %34, %38 : vector<16x128xf32>
    %40 = vector.extract_strided_slice %28 {offsets = [2, 0], sizes = [16, 144], strides = [1, 1]} : vector<18x144xf32> to vector<16x144xf32>
    %c2_27 = arith.constant 2 : index
    %c0_28 = arith.constant 0 : index
    %c0_29 = arith.constant 0 : index
    %41 = vector.load %arg5[%c2_27, %c0_28, %c0_29] : memref<3x144x128xf32, #tpu.memory_space<vmem>>, vector<1x144x128xf32>
    %42 = vector.shape_cast %41 : vector<1x144x128xf32> to vector<144x128xf32>
    %cst_30 = arith.constant dense<0.000000e+00> : vector<16x128xf32>
    %43 = tpu.matmul %40, %42, %cst_30 {dimension_numbers = #tpu.dot_dimension_numbers<[1], [0], [0], [1], [0, 0, 1, 1], [], []>} : vector<16x144xf32>, vector<144x128xf32>, vector<16x128xf32> -> vector<16x128xf32>
    %44 = arith.addf %39, %43 : vector<16x128xf32>
    %c0_31 = arith.constant 0 : index
    %c0_32 = arith.constant 0 : index
    %45 = vector.load %arg6[%c0_31, %c0_32] : memref<1x128xf32, #tpu.memory_space<vmem>>, vector<1x128xf32>
    %46 = vector.broadcast %45 : vector<1x128xf32> to vector<16x128xf32>
    %47 = arith.addf %44, %46 : vector<16x128xf32>
    %48 = vector.extract_strided_slice %2 {offsets = [1, 8], sizes = [16, 128], strides = [1, 1]} : vector<18x144xf32> to vector<16x128xf32>
    %49 = arith.addf %47, %48 : vector<16x128xf32>
    %cst_33 = arith.constant 0.000000e+00 : f32
    %50 = vector.broadcast %cst_33 : f32 to vector<16x128xf32>
    %51 = arith.cmpf ogt, %49, %50 : vector<16x128xf32>
    %52 = vector.broadcast %0 : f32 to vector<16x128xf32>
    %53 = arith.mulf %52, %49 : vector<16x128xf32>
    %54 = arith.select %51, %49, %53 : vector<16x128xi1>, vector<16x128xf32>
    %c0_34 = arith.constant 0 : index
    %c0_35 = arith.constant 0 : index
    %c0_36 = arith.constant 0 : index
    %55 = vector.load %arg7[%c0_34, %c0_35, %c0_36] : memref<1x16x128xf32, #tpu.memory_space<vmem>>, vector<1x16x128xf32>
    %56 = vector.shape_cast %55 : vector<1x16x128xf32> to vector<16x128xf32>
    %57 = vector.shape_cast %54 : vector<16x128xf32> to vector<1x16x128xf32>
    tpu.vector_store %arg7[%c0_34, %c0_35, %c0_36], %57 {strides = array<i32>} : memref<1x16x128xf32, #tpu.memory_space<vmem>>, vector<1x16x128xf32>,
    return
  }
  func.func @transform_0(%arg0: i32) -> (i32, i32) {
    %c0_i32 = arith.constant 0 : i32
    %c0_i32_0 = arith.constant 0 : i32
    %c0_i32_1 = arith.constant 0 : i32
    return %c0_i32, %c0_i32_0 : i32, i32
  }
  func.func @transform_1(%arg0: i32) -> (i32, i32, i32) {
    %c0_i32 = arith.constant 0 : i32
    %c0_i32_0 = arith.constant 0 : i32
    %c0_i32_1 = arith.constant 0 : i32
    return %arg0, %c0_i32, %c0_i32_0 : i32, i32, i32
  }
  func.func @transform_2(%arg0: i32) -> (i32, i32, i32) {
    %c0_i32 = arith.constant 0 : i32
    %c0_i32_0 = arith.constant 0 : i32
    %c0_i32_1 = arith.constant 0 : i32
    %c0_i32_2 = arith.constant 0 : i32
    return %c0_i32, %c0_i32_0, %c0_i32_1 : i32, i32, i32
  }
  func.func @transform_3(%arg0: i32) -> (i32, i32) {
    %c0_i32 = arith.constant 0 : i32
    %c0_i32_0 = arith.constant 0 : i32
    %c0_i32_1 = arith.constant 0 : i32
    return %c0_i32, %c0_i32_0 : i32, i32
  }
  func.func @transform_4(%arg0: i32) -> (i32, i32, i32) {
    %c0_i32 = arith.constant 0 : i32
    %c0_i32_0 = arith.constant 0 : i32
    %c0_i32_1 = arith.constant 0 : i32
    %c0_i32_2 = arith.constant 0 : i32
    return %c0_i32, %c0_i32_0, %c0_i32_1 : i32, i32, i32
  }
  func.func @transform_5(%arg0: i32) -> (i32, i32) {
    %c0_i32 = arith.constant 0 : i32
    %c0_i32_0 = arith.constant 0 : i32
    %c0_i32_1 = arith.constant 0 : i32
    return %c0_i32, %c0_i32_0 : i32, i32
  }
  func.func @transform_6(%arg0: i32) -> (i32, i32, i32) {
    %c0_i32 = arith.constant 0 : i32
    %c0_i32_0 = arith.constant 0 : i32
    %c0_i32_1 = arith.constant 0 : i32
    return %arg0, %c0_i32, %c0_i32_0 : i32, i32, i32
  }
}

</mosaic_0001>

<bundles_post_ra>
// kernel: tile.10
= control target key start
LH: loop header
LB: loop body
LE: loop exit
PB: predicated region body
PF: predicated region fallthrough
CT: control target
= control target key end

     0   :  { %s28_s0 = inlined_call_operand.vmem [shape: f32[8], index: 0, kind: input, shape index: {}]   ;;  %s29_s1 = inlined_call_operand.vmem [shape: f32[16,8], index: 1, kind: output, shape index: {}]  }
   0x1   :  { %v4_v0 = vld [vmem:[%s28_s0] ss:$0 sm:$0xff] }
   0x2   :  { %5 = vst [vmem:[%s29_s1] sm:$0xff] %v4_v0 }
   0x3   :  { %8 = vst [vmem:[%s29_s1 + $0x8] sm:$0xff] %v4_v0 }

// kernel: tile.11
= control target key start
LH: loop header
LB: loop body
LE: loop exit
PB: predicated region body
PF: predicated region fallthrough
CT: control target
= control target key end

     0   :  { %s131_s10 = smov 120   ;;  %s132_s11 = smov 104   ;;  %vm3_vm0 = vcmask 64512   ;;  %vm9_vm1 = vcmask 1048512   ;;  %vm15_vm2 = vcmask 982912   ;;  %vm21_vm3 = vcmask 917312   ;;  %s207_s0 = inlined_call_operand.vmem [shape: f32[16,8], index: 0, kind: input, shape index: {}]   ;;  %s208_s1 = inlined_call_operand.vmem [shape: f32[128], index: 1, kind: output, shape index: {}]  }
   0x1   :  { %v101_v0 = vld [vmem:[%s207_s0 + $0xf] sm:$0x1]   ;;  %v103_v1 = vld [vmem:[%s207_s0 + $0xd] sm:$0x1]   ;;  %v105_v2 = vld [vmem:[%s207_s0 + $0xb] sm:$0x1]  }
   0x2   :  { %7 = vrot.lane.b32.xlu0 %v101_v0, %s131_s10  ;;  %19 = vrot.lane.b32.xlu1 %v103_v1, %s132_s11  ;;  %s133_s14 = smov 88   ;;  %v102_v3 = vld [vmem:[%s207_s0 + $0xe] sm:$0x1]   ;;  %v104_v4 = vld [vmem:[%s207_s0 + $0xc] sm:$0x1]   ;;  %s134_s19 = smov 112  }
   0x3   :  { %31 = vrot.lane.b32.xlu2 %v105_v2, %s133_s14  ;;  %s135_s20 = smov 96   ;;  %v106_v5 = vld [vmem:[%s207_s0 + $0xa] sm:$0x1]   ;;  %s136_s23 = smov 80   ;;  %v107_v6 = vld [vmem:[%s207_s0 + $0x9] sm:$0x1]  }
   0x4   :  { %v108_v7 = vld [vmem:[%s207_s0 + $0x8] sm:$0x1]   ;;  %s137_s28 = smov 72   ;;  %s138_s29 = smov 64   ;;  %v109_v8 = vld [vmem:[%s207_s0 + $0x7] sm:$0x1]  }
   0x5   :  { %s139_s3 = smov 56   ;;  %v110_v9 = vld [vmem:[%s207_s0 + $0x6] sm:$0x1]   ;;  %v111_v10 = vld [vmem:[%s207_s0 + $0x5] sm:$0x1]   ;;  %s140_s8 = smov 48  }
   0x6   :  { %s141_s9 = smov 40   ;;  %v112_v11 = vld [vmem:[%s207_s0 + $0x4] sm:$0x1]   ;;  %s142_s12 = smov 32   ;;  %v113_v12 = vld [vmem:[%s207_s0 + $0x3] sm:$0x1]  }
   0x7   :  { %v114_v13 = vld [vmem:[%s207_s0 + $0x2] sm:$0x1]   ;;  %s143_s17 = smov 24   ;;  %s144_s18 = smov 16   ;;  %v115_v14 = vld [vmem:[%s207_s0 + $0x1] sm:$0x1]  }
   0x8   :  { %s145_s21 = smov 8   ;;  %v2_v15 = vld [vmem:[%s207_s0] sm:$0x1]   ;;  %vm27_vm4 = vcmask 851712   ;;  %vm33_vm5 = vcmask 786112   ;;  %vm39_vm6 = vcmask 720512  }
   0x9   :  { %4 = vst.msk [vmem:[#allocation0] sm:$0x1] %vm3_vm0, %v2_v15   ;;  %vm45_vm7 = vcmask 654912   ;;  %vm51_vm8 = vcmask 589312   ;;  %vm57_vm9 = vcmask 523712   ;;  %vm63_vm10 = vcmask 458112  }
   0xa   :  { %13 = vrot.lane.b32.xlu0 %v102_v3, %s134_s19  ;;  %25 = vrot.lane.b32.xlu1 %v104_v4, %s135_s20  ;;  %vm69_vm11 = vcmask 392512   ;;  %vm75_vm12 = vcmask 326912   ;;  %vm81_vm13 = vcmask 261312   ;;  %vm87_vm14 = vcmask 195712  }
   0xb   :  { %37 = vrot.lane.b32.xlu2 %v106_v5, %s136_s23  ;;  %vm93_vm15 = vcmask 130112  }
  0x12   :  { %43 = vrot.lane.b32.xlu0 %v107_v6, %s137_s28  ;;  %49 = vrot.lane.b32.xlu1 %v108_v7, %s138_s29 }
  0x13   :  { %55 = vrot.lane.b32.xlu2 %v109_v8, %s139_s3 }
  0x1a   :  { %61 = vrot.lane.b32.xlu0 %v110_v9, %s140_s8  ;;  %67 = vrot.lane.b32.xlu1 %v111_v10, %s141_s9 }
  0x1b   :  { %73 = vrot.lane.b32.xlu2 %v112_v11, %s142_s12 }
  0x22   :  { %79 = vrot.lane.b32.xlu0 %v113_v12, %s143_s17  ;;  %85 = vrot.lane.b32.xlu1 %v114_v13, %s144_s18 }
  0x23   :  { %91 = vrot.lane.b32.xlu2 %v115_v14, %s145_s21 }
  0x5d   :  { %v32_v16 = vpop.permute.xlu2 %31  }
  0x65   :  { %v38_v17 = vpop.permute.xlu2 %37  }
  0x6d   :  { %v56_v18 = vpop.permute.xlu2 %55  }
  0x74   :  { %v8_v19 = vpop.permute.xlu0 %7   ;;  %v20_v20 = vpop.permute.xlu1 %19  }
  0x75   :  { %10 = vst.msk [vmem:[#allocation0] sm:$0x1] %vm9_vm1, %v8_v19   ;;  %v74_v21 = vpop.permute.xlu2 %73  }
  0x7c   :  { %v14_v22 = vpop.permute.xlu0 %13   ;;  %v26_v23 = vpop.permute.xlu1 %25  }
  0x7d   :  { %16 = vst.msk [vmem:[#allocation0] sm:$0x1] %vm15_vm2, %v14_v22   ;;  %v92_v24 = vpop.permute.xlu2 %91  }
  0x7e   :  { %22 = vst.msk [vmem:[#allocation0] sm:$0x1] %vm21_vm3, %v20_v20  }
  0x7f   :  { %28 = vst.msk [vmem:[#allocation0] sm:$0x1] %vm27_vm4, %v26_v23  }
  0x80   :  { %34 = vst.msk [vmem:[#allocation0] sm:$0x1] %vm33_vm5, %v32_v16  }
  0x81   :  { %40 = vst.msk [vmem:[#allocation0] sm:$0x1] %vm39_vm6, %v38_v17  }
  0x84   :  { %v44_v25 = vpop.permute.xlu0 %43   ;;  %v50_v26 = vpop.permute.xlu1 %49  }
  0x85   :  { %46 = vst.msk [vmem:[#allocation0] sm:$0x1] %vm45_vm7, %v44_v25  }
  0x86   :  { %52 = vst.msk [vmem:[#allocation0] sm:$0x1] %vm51_vm8, %v50_v26  }
  0x87   :  { %58 = vst.msk [vmem:[#allocation0] sm:$0x1] %vm57_vm9, %v56_v18  }
  0x8c   :  { %v62_v27 = vpop.permute.xlu0 %61   ;;  %v68_v28 = vpop.permute.xlu1 %67  }
  0x8d   :  { %64 = vst.msk [vmem:[#allocation0] sm:$0x1] %vm63_vm10, %v62_v27  }
  0x8e   :  { %70 = vst.msk [vmem:[#allocation0] sm:$0x1] %vm69_vm11, %v68_v28  }
  0x8f   :  { %76 = vst.msk [vmem:[#allocation0] sm:$0x1] %vm75_vm12, %v74_v21  }
  0x94   :  { %v80_v29 = vpop.permute.xlu0 %79   ;;  %v86_v30 = vpop.permute.xlu1 %85  }
  0x95   :  { %82 = vst.msk [vmem:[#allocation0] sm:$0x1] %vm81_vm13, %v80_v29  }
  0x96   :  { %88 = vst.msk [vmem:[#allocation0] sm:$0x1] %vm87_vm14, %v86_v30  }
  0x97   :  { %94 = vst.msk [vmem:[#allocation0] sm:$0x1] %vm93_vm15, %v92_v24  }
  0x9e   :  { %v97_v31 = vld [vmem:[#allocation0] sm:$0x1] }
  0x9f   :  { %100 = vst [vmem:[%s208_s1] sm:$0x1] %v97_v31 }

// kernel: tile.15
= control target key start
LH: loop header
LB: loop body
LE: loop exit
PB: predicated region body
PF: predicated region fallthrough
CT: control target
= control target key end

     0   :  { %s131_s10 = smov 120   ;;  %s132_s11 = smov 104   ;;  %vm3_vm0 = vcmask 64512   ;;  %vm9_vm1 = vcmask 1048512   ;;  %vm15_vm2 = vcmask 982912   ;;  %vm21_vm3 = vcmask 917312   ;;  %s207_s0 = inlined_call_operand.vmem [shape: f32[16,8], index: 0, kind: input, shape index: {}]   ;;  %s208_s1 = inlined_call_operand.vmem [shape: f32[1,128], index: 1, kind: output, shape index: {}]  }
   0x1   :  { %v101_v0 = vld [vmem:[%s207_s0 + $0xf] sm:$0x1]   ;;  %v103_v1 = vld [vmem:[%s207_s0 + $0xd] sm:$0x1]   ;;  %v105_v2 = vld [vmem:[%s207_s0 + $0xb] sm:$0x1]  }
   0x2   :  { %7 = vrot.lane.b32.xlu0 %v101_v0, %s131_s10  ;;  %19 = vrot.lane.b32.xlu1 %v103_v1, %s132_s11  ;;  %s133_s14 = smov 88   ;;  %v102_v3 = vld [vmem:[%s207_s0 + $0xe] sm:$0x1]   ;;  %v104_v4 = vld [vmem:[%s207_s0 + $0xc] sm:$0x1]   ;;  %s134_s19 = smov 112  }
   0x3   :  { %31 = vrot.lane.b32.xlu2 %v105_v2, %s133_s14  ;;  %s135_s20 = smov 96   ;;  %v106_v5 = vld [vmem:[%s207_s0 + $0xa] sm:$0x1]   ;;  %s136_s23 = smov 80   ;;  %v107_v6 = vld [vmem:[%s207_s0 + $0x9] sm:$0x1]  }
   0x4   :  { %v108_v7 = vld [vmem:[%s207_s0 + $0x8] sm:$0x1]   ;;  %s137_s28 = smov 72   ;;  %s138_s29 = smov 64   ;;  %v109_v8 = vld [vmem:[%s207_s0 + $0x7] sm:$0x1]  }
   0x5   :  { %s139_s3 = smov 56   ;;  %v110_v9 = vld [vmem:[%s207_s0 + $0x6] sm:$0x1]   ;;  %v111_v10 = vld [vmem:[%s207_s0 + $0x5] sm:$0x1]   ;;  %s140_s8 = smov 48  }
   0x6   :  { %s141_s9 = smov 40   ;;  %v112_v11 = vld [vmem:[%s207_s0 + $0x4] sm:$0x1]   ;;  %s142_s12 = smov 32   ;;  %v113_v12 = vld [vmem:[%s207_s0 + $0x3] sm:$0x1]  }
   0x7   :  { %v114_v13 = vld [vmem:[%s207_s0 + $0x2] sm:$0x1]   ;;  %s143_s17 = smov 24   ;;  %s144_s18 = smov 16   ;;  %v115_v14 = vld [vmem:[%s207_s0 + $0x1] sm:$0x1]  }
   0x8   :  { %s145_s21 = smov 8   ;;  %v2_v15 = vld [vmem:[%s207_s0] sm:$0x1]   ;;  %vm27_vm4 = vcmask 851712   ;;  %vm33_vm5 = vcmask 786112   ;;  %vm39_vm6 = vcmask 720512  }
   0x9   :  { %4 = vst.msk [vmem:[#allocation0] sm:$0x1] %vm3_vm0, %v2_v15   ;;  %vm45_vm7 = vcmask 654912   ;;  %vm51_vm8 = vcmask 589312   ;;  %vm57_vm9 = vcmask 523712   ;;  %vm63_vm10 = vcmask 458112  }
   0xa   :  { %13 = vrot.lane.b32.xlu0 %v102_v3, %s134_s19  ;;  %25 = vrot.lane.b32.xlu1 %v104_v4, %s135_s20  ;;  %vm69_vm11 = vcmask 392512   ;;  %vm75_vm12 = vcmask 326912   ;;  %vm81_vm13 = vcmask 261312   ;;  %vm87_vm14 = vcmask 195712  }
   0xb   :  { %37 = vrot.lane.b32.xlu2 %v106_v5, %s136_s23  ;;  %vm93_vm15 = vcmask 130112  }
  0x12   :  { %43 = vrot.lane.b32.xlu0 %v107_v6, %s137_s28  ;;  %49 = vrot.lane.b32.xlu1 %v108_v7, %s138_s29 }
  0x13   :  { %55 = vrot.lane.b32.xlu2 %v109_v8, %s139_s3 }
  0x1a   :  { %61 = vrot.lane.b32.xlu0 %v110_v9, %s140_s8  ;;  %67 = vrot.lane.b32.xlu1 %v111_v10, %s141_s9 }
  0x1b   :  { %73 = vrot.lane.b32.xlu2 %v112_v11, %s142_s12 }
  0x22   :  { %79 = vrot.lane.b32.xlu0 %v113_v12, %s143_s17  ;;  %85 = vrot.lane.b32.xlu1 %v114_v13, %s144_s18 }
  0x23   :  { %91 = vrot.lane.b32.xlu2 %v115_v14, %s145_s21 }
  0x5d   :  { %v32_v16 = vpop.permute.xlu2 %31  }
  0x65   :  { %v38_v17 = vpop.permute.xlu2 %37  }
  0x6d   :  { %v56_v18 = vpop.permute.xlu2 %55  }
  0x74   :  { %v8_v19 = vpop.permute.xlu0 %7   ;;  %v20_v20 = vpop.permute.xlu1 %19  }
  0x75   :  { %10 = vst.msk [vmem:[#allocation0] sm:$0x1] %vm9_vm1, %v8_v19   ;;  %v74_v21 = vpop.permute.xlu2 %73  }
  0x7c   :  { %v14_v22 = vpop.permute.xlu0 %13   ;;  %v26_v23 = vpop.permute.xlu1 %25  }
  0x7d   :  { %16 = vst.msk [vmem:[#allocation0] sm:$0x1] %vm15_vm2, %v14_v22   ;;  %v92_v24 = vpop.permute.xlu2 %91  }
  0x7e   :  { %22 = vst.msk [vmem:[#allocation0] sm:$0x1] %vm21_vm3, %v20_v20  }
  0x7f   :  { %28 = vst.msk [vmem:[#allocation0] sm:$0x1] %vm27_vm4, %v26_v23  }
  0x80   :  { %34 = vst.msk [vmem:[#allocation0] sm:$0x1] %vm33_vm5, %v32_v16  }
  0x81   :  { %40 = vst.msk [vmem:[#allocation0] sm:$0x1] %vm39_vm6, %v38_v17  }
  0x84   :  { %v44_v25 = vpop.permute.xlu0 %43   ;;  %v50_v26 = vpop.permute.xlu1 %49  }
  0x85   :  { %46 = vst.msk [vmem:[#allocation0] sm:$0x1] %vm45_vm7, %v44_v25  }
  0x86   :  { %52 = vst.msk [vmem:[#allocation0] sm:$0x1] %vm51_vm8, %v50_v26  }
  0x87   :  { %58 = vst.msk [vmem:[#allocation0] sm:$0x1] %vm57_vm9, %v56_v18  }
  0x8c   :  { %v62_v27 = vpop.permute.xlu0 %61   ;;  %v68_v28 = vpop.permute.xlu1 %67  }
  0x8d   :  { %64 = vst.msk [vmem:[#allocation0] sm:$0x1] %vm63_vm10, %v62_v27  }
  0x8e   :  { %70 = vst.msk [vmem:[#allocation0] sm:$0x1] %vm69_vm11, %v68_v28  }
  0x8f   :  { %76 = vst.msk [vmem:[#allocation0] sm:$0x1] %vm75_vm12, %v74_v21  }
  0x94   :  { %v80_v29 = vpop.permute.xlu0 %79   ;;  %v86_v30 = vpop.permute.xlu1 %85  }
  0x95   :  { %82 = vst.msk [vmem:[#allocation0] sm:$0x1] %vm81_vm13, %v80_v29  }
  0x96   :  { %88 = vst.msk [vmem:[#allocation0] sm:$0x1] %vm87_vm14, %v86_v30  }
  0x97   :  { %94 = vst.msk [vmem:[#allocation0] sm:$0x1] %vm93_vm15, %v92_v24  }
  0x9e   :  { %v97_v31 = vld [vmem:[#allocation0] sm:$0x1] }
  0x9f   :  { %100 = vst [vmem:[%s208_s1] sm:$0x1] %v97_v31 }

// kernel: _lambda_.1
= control target key start
LH: loop header
LB: loop body
LE: loop exit
PB: predicated region body
PF: predicated region fallthrough
CT: control target
= control target key end

     0   :  { %s1255_s23 = smov 0   ;;  %s1912_s0 = inlined_call_operand.<no memory space> [shape: f32[1,1], index: 0, kind: input, shape index: {}]   ;;  %s1913_s1 = inlined_call_operand.vmem [shape: f32[2,18,144], index: 1, kind: input, shape index: {}]   ;;  %s1914_s2 = inlined_call_operand.vmem [shape: f32[3,144,144], index: 2, kind: input, shape index: {}]   ;;  %s1915_s3 = inlined_call_operand.vmem [shape: f32[1,144], index: 3, kind: input, shape index: {}]   ;;  %s1916_s4 = inlined_call_operand.vmem [shape: f32[3,144,128], index: 4, kind: input, shape index: {}]   ;;  %s1917_s5 = inlined_call_operand.vmem [shape: f32[1,128], index: 5, kind: input, shape index: {}]   ;;  %s1918_s6 = inlined_call_operand.vmem [shape: f32[2,16,128], index: 6, kind: output, shape index: {}]  }
   0x1   :  { %11 = sst [smem:[#allocation2]] %s1912_s0 }
   0x2 LB: > { %s1058_s24 = sadd.s32 4294967295, %s1214_s23   ;;  %p1062_p0 = scmp.ge.s32.totalorder %s1214_s23, 1  ;;  %s1214_s23 = sphi %s1255_s23, %s17_s23  }
   0x3   : > { %p213_p1 = scmp.lt.s32.totalorder %s1214_s23, 3 }
   0x5   : > { %p214_p2 = pnand %p1062_p0, %p213_p1 }
   0x6   : > { %p243_p3 = scmp.lt.s32.totalorder (!%p214_p2), %s1058_s24, 1  ;;  %s1216_s17 = smov (!%p214_p2), 120  }
   0x7   : > { %217 = sbr.rel (%p214_p2) target bundleno = 404 (0x194), region = 44  ;;  %s253_s22 = sld [smem:[#allocation2]] (!%p214_p2) }
   0xc   : > { %v1096_v0 = vld [vmem:[%s1914_s2 + $0x210] sm:$0xff]  ;;  %v1097_v2 = vld [vmem:[%s1914_s2 + $0x218] sm:$0xff]  ;;  %v1094_v3 = vld [vmem:[%s1914_s2 + $0x200] sm:$0xff]  ;;  %s1920_s24 = smov (!%p243_p3, %s1058_s24), 1  ;;  %vm339_vm0 = vcmask 1046528   ;;  %vm352_vm1 = vcmask 130048  }
   0xd   : > { %v1100_v1 = vld [vmem:[%s1914_s2 + $0x230] sm:$0xff]  ;;  %357 = vmatpush.msra.mxu0 %v1096_v0  ;;  %v1098_v4 = vld [vmem:[%s1914_s2 + $0x220] sm:$0xff]  ;;  %v1095_v5 = vld [vmem:[%s1914_s2 + $0x208] sm:$0xff]  ;;  %403 = vmatpush.msra.mxu2 %v1097_v2  ;;  %s1197_s27 = smul.u32 48, %s1920_s24  ;;  %vm582_vm2 = vcmask 1045504   ;;  %vm722_vm4 = vcmask 1040384  }
   0xe   : > { %394 = vmatpush.msra.mxu1 %v1100_v1  ;;  %v290_v6 = vld [vmem:[%s1914_s2 + $0xf0] sm:$0xff]  ;;  %v1093_v8 = vld [vmem:[%s1914_s2 + $0x1f8] sm:$0xff]  ;;  %v288_v10 = vld [vmem:[%s1914_s2 + $0xe0] sm:$0xff]  ;;  %vm988_vm9 = vcmask 982016   ;;  %s1196_s15 = sshll.u32 %s1920_s24, 4 }
   0xf   : > { %v1092_v7 = vld [vmem:[%s1914_s2 + $0x1f0] sm:$0xff]  ;;  %358 = vmatpush.msra.mxu0 %v1094_v3  ;;  %v1101_v9 = vld [vmem:[%s1914_s2 + $0x238] sm:$0xff]  ;;  %404 = vmatpush.msra.mxu2 %v1095_v5  ;;  %v1090_v11 = vld [vmem:[%s1914_s2 + $0x1e0] sm:$0xff]  ;;  %s1323_s16 = scalar_lea.vmem %s1913_s1, %s1197_s27  ;;  %s252_s19 = scalar_lea.vmem %s1918_s6, %s1196_s15 }
  0x10   : > { %395 = vmatpush.msra.mxu1 %v1098_v4  ;;  %v1099_v12 = vld [vmem:[%s1914_s2 + $0x228] sm:$0xff]  ;;  %440 = vmatpush.msra.mxu3 %v1101_v9  ;;  %v286_v14 = vld [vmem:[%s1914_s2 + $0xd0] sm:$0xff]  ;;  %v1089_v16 = vld [vmem:[%s1914_s2 + $0x1d8] sm:$0xff] }
  0x11   : > { %359 = vmatpush.msra.mxu0 %v1092_v7  ;;  %v1091_v13 = vld [vmem:[%s1914_s2 + $0x1e8] sm:$0xff]  ;;  %405 = vmatpush.msra.mxu2 %v1093_v8  ;;  %v1088_v15 = vld [vmem:[%s1914_s2 + $0x1d0] sm:$0xff]  ;;  %v284_v18 = vld [vmem:[%s1914_s2 + $0xc0] sm:$0xff] }
  0x12   : > { %453 = vmatpush.msrb.mxu1 %v290_v6  ;;  %v294_v17 = vld [vmem:[%s1914_s2 + $0x110] sm:$0xff]  ;;  %441 = vmatpush.msra.mxu3 %v1099_v12  ;;  %v1329_v19 = vld [vmem:[%s1323_s16 + $0x8] sm:$0xff]  ;;  %v1332_v20 = vld [vmem:[%s1323_s16 + $0x18] sm:$0xff] }
  0x13   : > { %360 = vmatpush.msra.mxu0 %v1090_v11  ;;  %406 = vmatpush.msra.mxu2 %v1091_v13  ;;  %v1086_v21 = vld [vmem:[%s1914_s2 + $0x1c0] sm:$0xff]  ;;  %v343_v22 = vrot.slane %v1329_v19, 1  ;;  %v344_v23 = vrot.slane %v1332_v20, 1  ;;  %v1087_v24 = vld [vmem:[%s1914_s2 + $0x1c8] sm:$0xff]  ;;  %v282_v27 = vld [vmem:[%s1914_s2 + $0xb0] sm:$0xff] }
  0x14   : > { %454 = vmatpush.msrb.mxu1 %v288_v10  ;;  %490 = vmatpush.msrb.mxu3 %v294_v17  ;;  %v292_v25 = vld [vmem:[%s1914_s2 + $0x100] sm:$0xff]  ;;  %v291_v28 = vld [vmem:[%s1914_s2 + $0xf8] sm:$0xff]  ;;  %v1084_v29 = vld [vmem:[%s1914_s2 + $0x1b0] sm:$0xff] }
  0x15   : > { %361 = vmatpush.msra.mxu0 %v1088_v15  ;;  %407 = vmatpush.msra.mxu2 %v1089_v16  ;;  %v1346_v26 = vsel %vm339_vm0, %v343_v22, %v344_v23  ;;  %v1085_v30 = vld [vmem:[%s1914_s2 + $0x1b8] sm:$0xff]  ;;  %v280_v31 = vld [vmem:[%s1914_s2 + $0xa0] sm:$0xff]  ;;  %v289_v32 = vld [vmem:[%s1914_s2 + $0xe8] sm:$0xff] }
  0x16   : > { %455 = vmatpush.msrb.mxu1 %v286_v14  ;;  %1104 = vmatmul.msk.f32.vlgmr.msra.gmra.mxu3 %vm352_vm1, %v1346_v26  ;;  %v1082_v33 = vld [vmem:[%s1914_s2 + $0x1a0] sm:$0xff]  ;;  %v1083_v34 = vld [vmem:[%s1914_s2 + $0x1a8] sm:$0xff]  ;;  %v278_v36 = vld [vmem:[%s1914_s2 + $0x90] sm:$0xff] }
  0x17   : > { %362 = vmatpush.msra.mxu0 %v1086_v21  ;;  %408 = vmatpush.msra.mxu2 %v1087_v24  ;;  %v1375_v35 = vld [vmem:[%s1323_s16 + $0x28] sm:$0x3]  ;;  %v287_v37 = vld [vmem:[%s1914_s2 + $0xd8] sm:$0xff]  ;;  %v1080_v39 = vld [vmem:[%s1914_s2 + $0x190] sm:$0xff] }
  0x18   : > { %456 = vmatpush.msrb.mxu1 %v284_v18  ;;  %491 = vmatpush.msrb.mxu3 %v292_v25  ;;  %v348_v38 = vrot.slane %v1375_v35, 1  ;;  %v1081_v40 = vld [vmem:[%s1914_s2 + $0x198] sm:$0xff]  ;;  %v276_v41 = vld [vmem:[%s1914_s2 + $0x80] sm:$0xff]  ;;  %v285_v42 = vld [vmem:[%s1914_s2 + $0xc8] sm:$0xff] }
  0x19   : > { %363 = vmatpush.msra.mxu0 %v1084_v29  ;;  %409 = vmatpush.msra.mxu2 %v1085_v30  ;;  %v1078_v43 = vld [vmem:[%s1914_s2 + $0x180] sm:$0xff]  ;;  %v1079_v44 = vld [vmem:[%s1914_s2 + $0x188] sm:$0xff]  ;;  %v274_v46 = vld [vmem:[%s1914_s2 + $0x70] sm:$0xff] }
  0x1a   : > { %457 = vmatpush.msrb.mxu1 %v282_v27  ;;  %499 = vmatpush.msra.mxu3 %v291_v28  ;;  %v1403_v45 = vsel %vm339_vm0, %v344_v23, %v348_v38  ;;  %v283_v47 = vld [vmem:[%s1914_s2 + $0xb8] sm:$0xff]  ;;  %v1076_v48 = vld [vmem:[%s1914_s2 + $0x170] sm:$0xff]  ;;  %v272_v50 = vld [vmem:[%s1914_s2 + $0x60] sm:$0xff] }
  0x1b   : > { %364 = vmatpush.msra.mxu0 %v1082_v33  ;;  %410 = vmatpush.msra.mxu2 %v1083_v34  ;;  %v1077_v49 = vld [vmem:[%s1914_s2 + $0x178] sm:$0xff]  ;;  %v281_v51 = vld [vmem:[%s1914_s2 + $0xa8] sm:$0xff]  ;;  %v1074_v52 = vld [vmem:[%s1914_s2 + $0x160] sm:$0xff] }
  0x1c   : > { %458 = vmatpush.msrb.mxu1 %v280_v31  ;;  %500 = vmatpush.msra.mxu3 %v289_v32  ;;  %v1075_v53 = vld [vmem:[%s1914_s2 + $0x168] sm:$0xff]  ;;  %v270_v54 = vld [vmem:[%s1914_s2 + $0x50] sm:$0xff]  ;;  %v279_v55 = vld [vmem:[%s1914_s2 + $0x98] sm:$0xff] }
  0x1d   : > { %365 = vmatpush.msra.mxu0 %v1080_v39  ;;  %411 = vmatpush.msra.mxu2 %v1081_v40  ;;  %v1072_v56 = vld [vmem:[%s1914_s2 + $0x150] sm:$0xff]  ;;  %v1073_v57 = vld [vmem:[%s1914_s2 + $0x158] sm:$0xff]  ;;  %v268_v58 = vld [vmem:[%s1914_s2 + $0x40] sm:$0xff] }
  0x1e   : > { %459 = vmatpush.msrb.mxu1 %v278_v36  ;;  %501 = vmatpush.msra.mxu3 %v287_v37  ;;  %v277_v59 = vld [vmem:[%s1914_s2 + $0x88] sm:$0xff]  ;;  %v1452_v60 = vld [vmem:[%s1323_s16] sm:$0xff]  ;;  %v1455_v61 = vld [vmem:[%s1323_s16 + $0x10] sm:$0xff] }
  0x1f   : > { %366 = vmatpush.msra.mxu0 %v1078_v43  ;;  %1102 = vmatmul.msk.f32.vlgmr.msra.gmra.mxu1 %vm352_vm1, %v1346_v26  ;;  %v1070_v62 = vld [vmem:[%s1914_s2 + $0x140] sm:$0xff]  ;;  %v1071_v63 = vld [vmem:[%s1914_s2 + $0x148] sm:$0xff]  ;;  %v266_v0 = vld [vmem:[%s1914_s2 + $0x30] sm:$0xff]  ;;  %v340_v2 = vrot.slane %v1452_v60, 1  ;;  %v341_v3 = vrot.slane %v1455_v61, 1  ;;  %v587_v43 = vrot.slane %v1332_v20, 2 }
  0x20   : > { %460 = vmatpush.msrb.mxu1 %v276_v41  ;;  %502 = vmatpush.msra.mxu3 %v285_v42  ;;  %v275_v1 = vld [vmem:[%s1914_s2 + $0x78] sm:$0xff]  ;;  %v1068_v4 = vld [vmem:[%s1914_s2 + $0x130] sm:$0xff]  ;;  %v264_v6 = vld [vmem:[%s1914_s2 + $0x20] sm:$0xff]  ;;  %v586_v42 = vrot.slane %v1329_v19, 2 }
  0x21   : > { %412 = vmatpush.msra.mxu2 %v1079_v44  ;;  %1105 = vmatmul.msk.f32.gmra.mxu3 %vm352_vm1, %v1403_v45  ;;  %v1069_v5 = vld [vmem:[%s1914_s2 + $0x138] sm:$0xff]  ;;  %v273_v7 = vld [vmem:[%s1914_s2 + $0x68] sm:$0xff]  ;;  %v1066_v8 = vld [vmem:[%s1914_s2 + $0x120] sm:$0xff]  ;;  %v1494_v10 = vsel %vm339_vm0, %v340_v2, %v341_v3 }
  0x22   : > { %461 = vmatpush.msrb.mxu1 %v274_v46  ;;  %503 = vmatpush.msra.mxu3 %v283_v47  ;;  %v1067_v9 = vld [vmem:[%s1914_s2 + $0x128] sm:$0xff]  ;;  %v262_v11 = vld [vmem:[%s1914_s2 + $0x10] sm:$0xff]  ;;  %v271_v12 = vld [vmem:[%s1914_s2 + $0x58] sm:$0xff] }
  0x23   : > { %367 = vmatpush.msra.mxu0 %v1076_v48  ;;  %413 = vmatpush.msra.mxu2 %v1077_v49  ;;  %v1140_v13 = vld [vmem:[%s1914_s2 + $0x330] sm:$0xff]  ;;  %v295_v14 = vld [vmem:[%s1914_s2 + $0x118] sm:$0xff]  ;;  %v1509_v15 = vld [vmem:[%s1323_s16 + $0x20] sm:$0x3] }
  0x24   : > { %462 = vmatpush.msrb.mxu1 %v272_v50  ;;  %504 = vmatpush.msra.mxu3 %v281_v51  ;;  %v260_v16 = vld [vmem:[%s1914_s2] sm:$0xff]  ;;  %v269_v17 = vld [vmem:[%s1914_s2 + $0x48] sm:$0xff]  ;;  %v346_v22 = vrot.slane %v1509_v15, 1  ;;  %v267_v23 = vld [vmem:[%s1914_s2 + $0x38] sm:$0xff]  ;;  %v588_v51 = vsel %vm582_vm2, %v586_v42, %v587_v43 }
  0x25   : > { %368 = vmatpush.msra.mxu0 %v1074_v52  ;;  %414 = vmatpush.msra.mxu2 %v1075_v53  ;;  %v1138_v18 = vld [vmem:[%s1914_s2 + $0x320] sm:$0xff]  ;;  %v293_v21 = vld [vmem:[%s1914_s2 + $0x108] sm:$0xff]  ;;  %v1136_v24 = vld [vmem:[%s1914_s2 + $0x310] sm:$0xff] }
  0x26   : > { %463 = vmatpush.msrb.mxu1 %v270_v54  ;;  %505 = vmatpush.msra.mxu3 %v279_v55  ;;  %v1141_v25 = vld [vmem:[%s1914_s2 + $0x338] sm:$0xff]  ;;  %v1144_v27 = vld [vmem:[%s1914_s2 + $0x350] sm:$0xff]  ;;  %v265_v28 = vld [vmem:[%s1914_s2 + $0x28] sm:$0xff]  ;;  %v1551_v31 = vsel %vm339_vm0, %v341_v3, %v346_v22 }
  0x27   : > { %369 = vmatpush.msra.mxu0 %v1072_v56  ;;  %415 = vmatpush.msra.mxu2 %v1073_v57  ;;  %v1134_v29 = vld [vmem:[%s1914_s2 + $0x300] sm:$0xff]  ;;  %v1139_v30 = vld [vmem:[%s1914_s2 + $0x328] sm:$0xff]  ;;  %v263_v32 = vld [vmem:[%s1914_s2 + $0x18] sm:$0xff]  ;;  %v591_v56 = vrot.slane %v1375_v35, 2 }
  0x28   : > { %464 = vmatpush.msrb.mxu1 %v268_v58  ;;  %506 = vmatpush.msra.mxu3 %v277_v59  ;;  %v1132_v33 = vld [vmem:[%s1914_s2 + $0x2f0] sm:$0xff]  ;;  %v1137_v34 = vld [vmem:[%s1914_s2 + $0x318] sm:$0xff]  ;;  %v261_v36 = vld [vmem:[%s1914_s2 + $0x8] sm:$0xff] }
  0x29   : > { %370 = vmatpush.msra.mxu0 %v1070_v62  ;;  %1103 = vmatmul.msk.f32.gmra.mxu1 %vm352_vm1, %v1403_v45  ;;  %v1130_v37 = vld [vmem:[%s1914_s2 + $0x2e0] sm:$0xff]  ;;  %v1135_v38 = vld [vmem:[%s1914_s2 + $0x308] sm:$0xff]  ;;  %v1128_v40 = vld [vmem:[%s1914_s2 + $0x2d0] sm:$0xff]  ;;  %v592_v59 = vsel %vm582_vm2, %v587_v43, %v591_v56 }
  0x2a   : > { %416 = vmatpush.msra.mxu2 %v1071_v63  ;;  %1106 = vmatmul.msk.f32.vlgmr.msrb.gmra.mxu3 %vm352_vm1, %v1329_v19  ;;  %v1142_v39 = vld [vmem:[%s1914_s2 + $0x340] sm:$0xff]  ;;  %v1133_v41 = vld [vmem:[%s1914_s2 + $0x2f8] sm:$0xff]  ;;  %v1131_v47 = vld [vmem:[%s1914_s2 + $0x2e8] sm:$0xff] }
  0x2b   : > { %465 = vmatpush.msrb.mxu1 %v266_v0  ;;  %507 = vmatpush.msra.mxu3 %v275_v1  ;;  %v1145_v44 = vld [vmem:[%s1914_s2 + $0x358] sm:$0xff]  ;;  %v1126_v46 = vld [vmem:[%s1914_s2 + $0x2c0] sm:$0xff]  ;;  %v1143_v48 = vld [vmem:[%s1914_s2 + $0x348] sm:$0xff]  ;;  %v583_v0 = vrot.slane %v1452_v60, 2  ;;  %v584_v1 = vrot.slane %v1455_v61, 2 }
  0x2c   : > { %371 = vmatpush.msra.mxu0 %v1068_v4  ;;  %417 = vmatpush.msra.mxu2 %v1069_v5  ;;  %v1124_v49 = vld [vmem:[%s1914_s2 + $0x2b0] sm:$0xff]  ;;  %v1129_v50 = vld [vmem:[%s1914_s2 + $0x2d8] sm:$0xff]  ;;  %v1122_v52 = vld [vmem:[%s1914_s2 + $0x2a0] sm:$0xff] }
  0x2d   : > { %466 = vmatpush.msrb.mxu1 %v264_v6  ;;  %508 = vmatpush.msra.mxu3 %v273_v7  ;;  %v1127_v53 = vld [vmem:[%s1914_s2 + $0x2c8] sm:$0xff]  ;;  %v1120_v54 = vld [vmem:[%s1914_s2 + $0x290] sm:$0xff]  ;;  %v1125_v55 = vld [vmem:[%s1914_s2 + $0x2b8] sm:$0xff]  ;;  %v589_v6 = vrot.slane %v1509_v15, 2 }
  0x2e   : > { %372 = vmatpush.msra.mxu0 %v1066_v8  ;;  %418 = vmatpush.msra.mxu2 %v1067_v9  ;;  %v1123_v57 = vld [vmem:[%s1914_s2 + $0x2a8] sm:$0xff]  ;;  %v1116_v58 = vld [vmem:[%s1914_s2 + $0x270] sm:$0xff]  ;;  %v1121_v35 = vld [vmem:[%s1914_s2 + $0x298] sm:$0xff] }
  0x2f   : > { %373 = vmatmul.f32.vlgmr.msra.gmra.mxu0 %v1494_v10  ;;  %419 = vmatmul.f32.vlgmr.msra.gmra.mxu2 %v1494_v10  ;;  %v1114_v62 = vld [vmem:[%s1914_s2 + $0x260] sm:$0xff]  ;;  %v1119_v63 = vld [vmem:[%s1914_s2 + $0x288] sm:$0xff]  ;;  %v1112_v2 = vld [vmem:[%s1914_s2 + $0x250] sm:$0xff]  ;;  %v590_v7 = vsel %vm582_vm2, %v584_v1, %v589_v6 }
  0x30   : > { %467 = vmatpush.msrb.mxu1 %v262_v11  ;;  %509 = vmatpush.msra.mxu3 %v271_v12  ;;  %v1117_v3 = vld [vmem:[%s1914_s2 + $0x278] sm:$0xff]  ;;  %v1111_v5 = vld [vmem:[%s1914_s2 + $0x248] sm:$0xff]  ;;  %v752_v12 = vld [vmem:[%s1916_s4 + $0x70] sm:$0xff] }
  0x31   : > { %599 = vmatpush.msrb.mxu2 %v1140_v13  ;;  %536 = vmatpush.msrb.mxu0 %v295_v14  ;;  %v1113_v4 = vld [vmem:[%s1914_s2 + $0x258] sm:$0xff]  ;;  %v748_v14 = vld [vmem:[%s1916_s4 + $0x50] sm:$0xff]  ;;  %v746_v22 = vld [vmem:[%s1916_s4 + $0x40] sm:$0xff] }
  0x32   : > { %468 = vmatpush.msrb.mxu1 %v260_v16  ;;  %510 = vmatpush.msra.mxu3 %v269_v17  ;;  %v753_v9 = vld [vmem:[%s1916_s4 + $0x78] sm:$0xff]  ;;  %v1165_v16 = vld [vmem:[%s1916_s4 + $0x108] sm:$0xff]  ;;  %v740_v42 = vld [vmem:[%s1916_s4 + $0x10] sm:$0xff] }
  0x33   : > { %600 = vmatpush.msrb.mxu2 %v1138_v18  ;;  %469 = vmatmul.f32.vlgmr.msrb.gmra.mxu1 %v1452_v60  ;;  %v749_v13 = vld [vmem:[%s1916_s4 + $0x58] sm:$0xff]  ;;  %v747_v17 = vld [vmem:[%s1916_s4 + $0x48] sm:$0xff]  ;;  %v1164_v18 = vld [vmem:[%s1916_s4 + $0x100] sm:$0xff] }
  0x34   : > { %1107 = vmatmul.msk.f32.gmra.mxu3 %vm352_vm1, %v1332_v20  ;;  %537 = vmatpush.msrb.mxu0 %v293_v21  ;;  %v1189_v43 = vld [vmem:[%s1916_s4 + $0x198] sm:$0xff]  ;;  %vm1170_vm6 = vmneg %vm722_vm4 }
  0x35   : > { %511 = vmatpush.msra.mxu3 %v267_v23  ;;  %601 = vmatpush.msrb.mxu2 %v1136_v24  ;;  %v1163_v23 = vld [vmem:[%s1916_s4 + $0xf8] sm:$0xff] }
  0x36   : > { %645 = vmatpush.msra.mxu0 %v1141_v25  ;;  %636 = vmatpush.msra.mxu1 %v1144_v27  ;;  %v745_v24 = vld [vmem:[%s1916_s4 + $0x38] sm:$0xff]  ;;  %v1162_v27 = vld [vmem:[%s1916_s4 + $0xf0] sm:$0xff] }
  0x37   : > { %512 = vmatpush.msra.mxu3 %v265_v28  ;;  %602 = vmatpush.msrb.mxu2 %v1134_v29  ;;  %v744_v28 = vld [vmem:[%s1916_s4 + $0x30] sm:$0xff]  ;;  %v1161_v29 = vld [vmem:[%s1916_s4 + $0xe8] sm:$0xff]  ;;  %v1155_v56 = vld [vmem:[%s1916_s4 + $0xb8] sm:$0xff] }
  0x38   : > { %646 = vmatpush.msra.mxu0 %v1139_v30  ;;  %422 = vmatmul.f32.gmra.mxu2 %v1551_v31  ;;  %v743_v30 = vld [vmem:[%s1916_s4 + $0x28] sm:$0xff] }
  0x39   : > { %376 = vmatmul.f32.gmra.mxu0 %v1551_v31  ;;  %513 = vmatpush.msra.mxu3 %v263_v32 }
  0x3a   : > { %603 = vmatpush.msrb.mxu2 %v1132_v33  ;;  %647 = vmatpush.msra.mxu0 %v1137_v34  ;;  %v1160_v33 = vld [vmem:[%s1916_s4 + $0xe0] sm:$0xff] }
  0x3b   : > { %514 = vmatpush.msra.mxu3 %v261_v36  ;;  %472 = vmatmul.f32.gmra.mxu1 %v1455_v61  ;;  %v742_v34 = vld [vmem:[%s1916_s4 + $0x20] sm:$0xff]  ;;  %v1167_v36 = vld [vmem:[%s1916_s4 + $0x118] sm:$0xff] }
  0x3c   : > { %604 = vmatpush.msrb.mxu2 %v1130_v37  ;;  %648 = vmatpush.msra.mxu0 %v1135_v38  ;;  %v1159_v38 = vld [vmem:[%s1916_s4 + $0xd8] sm:$0xff] }
  0x3d   : > { %515 = vmatmul.f32.vlgmr.msra.gmra.mxu3 %v1452_v60  ;;  %637 = vmatpush.msra.mxu1 %v1142_v39  ;;  %v1115_v60 = vld [vmem:[%s1914_s2 + $0x268] sm:$0xff]  ;;  %v741_v39 = vld [vmem:[%s1916_s4 + $0x18] sm:$0xff] }
  0x3e   : > { %605 = vmatpush.msrb.mxu2 %v1128_v40  ;;  %649 = vmatpush.msra.mxu0 %v1133_v41  ;;  %v1166_v40 = vld [vmem:[%s1916_s4 + $0x110] sm:$0xff] }
  0x3f   : > { %682 = vmatpush.msrb.mxu1 %v1145_v44  ;;  %984 = vrot.lane.b32.xlu1 %v1551_v31, %s1216_s17  ;;  %v1158_v41 = vld [vmem:[%s1916_s4 + $0xd0] sm:$0xff]  ;;  %v755_v44 = vld [vmem:[%s1916_s4 + $0x88] sm:$0xff] }
  0x40   : > { %606 = vmatpush.msrb.mxu2 %v1126_v46  ;;  %650 = vmatpush.msra.mxu0 %v1131_v47  ;;  %v1157_v46 = vld [vmem:[%s1916_s4 + $0xc8] sm:$0xff] }
  0x41   : > { %1108 = vmatmul.msk.f32.vlgmr.msrb.gmra.mxu0 %vm352_vm1, %v1329_v19  ;;  %683 = vmatpush.msrb.mxu1 %v1143_v48  ;;  %v1118_v19 = vld [vmem:[%s1914_s2 + $0x280] sm:$0xff]  ;;  %v739_v47 = vld [vmem:[%s1916_s4 + $0x8] sm:$0xff]  ;;  %v1188_v48 = vld [vmem:[%s1916_s4 + $0x190] sm:$0xff] }
  0x42   : > { %607 = vmatpush.msrb.mxu2 %v1124_v49  ;;  %651 = vmatpush.msra.mxu0 %v1129_v50  ;;  %v754_v49 = vld [vmem:[%s1916_s4 + $0x80] sm:$0xff] }
  0x43   : > { %1146 = vmatmul.msk.f32.vlgmr.msra.gmra.mxu1 %vm352_vm1, %v588_v51  ;;  %980 = vrot.lane.b32.xlu0 %v1494_v10, %s1216_s17 }
  0x44   : > { %608 = vmatpush.msrb.mxu2 %v1122_v52  ;;  %652 = vmatpush.msra.mxu0 %v1127_v53  ;;  %v738_v52 = vld [vmem:[%s1916_s4] sm:$0xff]  ;;  %v1187_v53 = vld [vmem:[%s1916_s4 + $0x188] sm:$0xff] }
  0x45   : > { %518 = vmatmul.f32.gmra.mxu3 %v1455_v61  ;;  %v585_v61 = vsel %vm582_vm2, %v583_v0, %v584_v1  ;;  %845 = vmatpush.msra.mxu1 %v753_v9  ;;  %v1183_v0 = vld [vmem:[%s1916_s4 + $0x168] sm:$0xff]  ;;  %v1151_v1 = vld [vmem:[%s1916_s4 + $0x98] sm:$0xff]  ;;  %v1180_v9 = vld [vmem:[%s1916_s4 + $0x150] sm:$0xff] }
  0x46   : > { %609 = vmatpush.msrb.mxu2 %v1120_v54  ;;  %653 = vmatpush.msra.mxu0 %v1125_v55 }
  0x47   : > { %986 = vrot.lane.b32.xlu1 %v1403_v45, %s1216_s17  ;;  %846 = vmatpush.msra.mxu1 %v752_v12  ;;  %v751_v45 = vld [vmem:[%s1916_s4 + $0x68] sm:$0xff] }
  0x48   : > { %610 = vmatpush.msrb.mxu2 %v1118_v19  ;;  %654 = vmatpush.msra.mxu0 %v1123_v57  ;;  %v1186_v19 = vld [vmem:[%s1916_s4 + $0x180] sm:$0xff] }
  0x49   : > { %1109 = vmatmul.msk.f32.gmra.mxu0 %vm352_vm1, %v1332_v20  ;;  %v1110_v20 = vld [vmem:[%s1914_s2 + $0x240] sm:$0xff]  ;;  %847 = vmatpush.msra.mxu1 %v751_v45  ;;  %v1179_v45 = vld [vmem:[%s1916_s4 + $0x148] sm:$0xff] }
  0x4a   : > { %611 = vmatpush.msrb.mxu2 %v1116_v58  ;;  %655 = vmatpush.msra.mxu0 %v1121_v35  ;;  %v1154_v58 = vld [vmem:[%s1916_s4 + $0xb0] sm:$0xff]  ;;  %v1185_v35 = vld [vmem:[%s1916_s4 + $0x178] sm:$0xff] }
  0x4b   : > { %1147 = vmatmul.msk.f32.gmra.mxu1 %vm352_vm1, %v592_v59  ;;  %982 = vrot.lane.b32.xlu0 %v1346_v26, %s1216_s17  ;;  %v750_v26 = vld [vmem:[%s1916_s4 + $0x60] sm:$0xff] }
  0x4c   : > { %612 = vmatpush.msrb.mxu2 %v1114_v62  ;;  %656 = vmatpush.msra.mxu0 %v1119_v63  ;;  %v1184_v62 = vld [vmem:[%s1916_s4 + $0x170] sm:$0xff]  ;;  %v1152_v63 = vld [vmem:[%s1916_s4 + $0xa0] sm:$0xff] }
  0x4d   : > { %848 = vmatpush.msra.mxu1 %v750_v26  ;;  %795 = vmatpush.msrb.mxu3 %v1165_v16  ;;  %v1178_v26 = vld [vmem:[%s1916_s4 + $0x140] sm:$0xff] }
  0x4e   : > { %613 = vmatpush.msrb.mxu2 %v1112_v2  ;;  %657 = vmatpush.msra.mxu0 %v1117_v3  ;;  %v695_v16 = vld [vmem:[%s1915_s3] sm:$0x3] }
  0x4f   : > { %849 = vmatpush.msra.mxu1 %v749_v13  ;;  %796 = vmatpush.msrb.mxu3 %v1164_v18 }
  0x50   : > { %614 = vmatpush.msrb.mxu2 %v1110_v20  ;;  %658 = vmatpush.msra.mxu0 %v1115_v60  ;;  %v1182_v20 = vld [vmem:[%s1916_s4 + $0x160] sm:$0xff] }
  0x51   : > { %615 = vmatmul.f32.vlgmr.msrb.gmra.mxu2 %v585_v61  ;;  %850 = vmatpush.msra.mxu1 %v748_v14 }
  0x52   : > { %659 = vmatpush.msra.mxu0 %v1113_v4  ;;  %797 = vmatpush.msrb.mxu3 %v1163_v23  ;;  %v1181_v4 = vld [vmem:[%s1916_s4 + $0x158] sm:$0xff]  ;;  %v698_v23 = vperm.slane %v695_v16, 1 }
  0x53   : > { %1148 = vmatmul.msk.f32.vlgmr.msrb.gmra.mxu1 %vm352_vm1, %v588_v51  ;;  %832 = vmatpush.msra.mxu2 %v1167_v36  ;;  %v1156_v51 = vld [vmem:[%s1916_s4 + $0xc0] sm:$0xff]  ;;  %v697_v36 = vperm.slane %v695_v16, 0 }
  0x54   : > { %660 = vmatpush.msra.mxu0 %v1111_v5  ;;  %851 = vmatpush.msra.mxu1 %v747_v17  ;;  %v1177_v17 = vld [vmem:[%s1916_s4 + $0x138] sm:$0xff] }
  0x55   : > { %661 = vmatmul.f32.vlgmr.msra.gmra.mxu0 %v585_v61  ;;  %798 = vmatpush.msrb.mxu3 %v1162_v27  ;;  %v1150_v61 = vld [vmem:[%s1916_s4 + $0x90] sm:$0xff] }
  0x56   : > { %852 = vmatpush.msra.mxu1 %v746_v22  ;;  %833 = vmatpush.msra.mxu2 %v1166_v40 }
  0x57   : > { %799 = vmatpush.msrb.mxu3 %v1161_v29  ;;  %882 = vmatpush.msrb.mxu0 %v755_v44  ;;  %v1176_v29 = vld [vmem:[%s1916_s4 + $0x130] sm:$0xff] }
  0x58   : > { %853 = vmatpush.msra.mxu1 %v745_v24  ;;  %926 = vmatpush.msrb.mxu2 %v1189_v43 }
  0x59   : > { %618 = vmatmul.f32.gmra.mxu2 %v590_v7  ;;  %800 = vmatpush.msrb.mxu3 %v1160_v33 }
  0x5a   : > { %854 = vmatpush.msra.mxu1 %v744_v28  ;;  %927 = vmatpush.msrb.mxu2 %v1188_v48  ;;  %v1190_v28 = vld [vmem:[%s1916_s4 + $0x1a0] sm:$0xff] }
  0x5b   : > { %1149 = vmatmul.msk.f32.gmra.mxu1 %vm352_vm1, %v592_v59  ;;  %801 = vmatpush.msrb.mxu3 %v1159_v38  ;;  %v1153_v59 = vld [vmem:[%s1916_s4 + $0xa8] sm:$0xff]  ;;  %v1865_v38 = vstv %s253_s22 }
  0x5c   : > { %855 = vmatpush.msra.mxu1 %v743_v30  ;;  %883 = vmatpush.msrb.mxu0 %v754_v49 }
  0x5d   : > { %664 = vmatmul.f32.gmra.mxu0 %v590_v7  ;;  %802 = vmatpush.msrb.mxu3 %v1158_v41  ;;  %v1191_v7 = vld [vmem:[%s1916_s4 + $0x1a8] sm:$0xff]  ;;  %v1174_v41 = vld [vmem:[%s1916_s4 + $0x120] sm:$0xff] }
  0x5e   : > { %856 = vmatpush.msra.mxu1 %v742_v34  ;;  %928 = vmatpush.msrb.mxu2 %v1187_v53 }
  0x5f   : > { %803 = vmatpush.msrb.mxu3 %v1157_v46 }
  0x60   : > { %857 = vmatpush.msra.mxu1 %v741_v39  ;;  %929 = vmatpush.msrb.mxu2 %v1186_v19 }
  0x61   : > { %804 = vmatpush.msrb.mxu3 %v1156_v51 }
  0x62   : > { %858 = vmatpush.msra.mxu1 %v740_v42  ;;  %930 = vmatpush.msrb.mxu2 %v1185_v35 }
  0x63   : > { %805 = vmatpush.msrb.mxu3 %v1155_v56 }
  0x64   : > { %859 = vmatpush.msra.mxu1 %v739_v47  ;;  %931 = vmatpush.msrb.mxu2 %v1184_v62 }
  0x65   : > { %806 = vmatpush.msrb.mxu3 %v1154_v58 }
  0x66   : > { %860 = vmatpush.msra.mxu1 %v738_v52  ;;  %932 = vmatpush.msrb.mxu2 %v1183_v0 }
  0x67   : > { %807 = vmatpush.msrb.mxu3 %v1153_v59 }
  0x68   : > { %933 = vmatpush.msrb.mxu2 %v1182_v20 }
  0x69   : > { %808 = vmatpush.msrb.mxu3 %v1152_v63 }
  0x6a   : > { %934 = vmatpush.msrb.mxu2 %v1181_v4 }
  0x6b   : > { %809 = vmatpush.msrb.mxu3 %v1151_v1 }
  0x6c   : > { %935 = vmatpush.msrb.mxu2 %v1180_v9 }
  0x6d   : > { %810 = vmatpush.msrb.mxu3 %v1150_v61 }
  0x6e   : > { %936 = vmatpush.msrb.mxu2 %v1179_v45 }
  0x6f   : > { %963 = vmatpush.msra.mxu3 %v1191_v7 }
  0x70   : > { %937 = vmatpush.msrb.mxu2 %v1178_v26 }
  0x71   : > { %964 = vmatpush.msra.mxu3 %v1190_v28 }
  0x72   : > { %938 = vmatpush.msrb.mxu2 %v1177_v17 }
  0x74   : > { %939 = vmatpush.msrb.mxu2 %v1176_v29 }
  0x99   : > { %v1678_v11 = vpop.f32.mrf.mxu3 }
  0x9c   : > { %v1673_v8 = vpop.f32.mrf.mxu1 }
  0xa4   : > { %v1697_v15 = vpop.f32.mrf.mxu3 }
  0xa6   : > { %v1689_v10 = vpop.f32.mrf.mxu1 }
  0xac   : > { %v1708_v21 = vpop.f32.mrf.mxu0 }
  0xad   : > { %v1733_v31 = vpop.f32.mrf.mxu3  ;;  %v398_v5 = vadd.f32 %v1673_v8, %v1708_v21 }
  0xb0   : > { %v1719_v25 = vpop.f32.mrf.mxu1 }
  0xb1   : > { %v471_v13 = vadd.f32 %v1719_v25, %v398_v5 }
  0xb2   : > { %v420_v57 = vpop.f32.mrf.mxu2 }
  0xb3   : > { %v444_v12 = vadd.f32 %v1678_v11, %v420_v57  ;;  %v494_v24 = vadd.f32 %v1733_v31, %v471_v13 }
  0xb6   : > { %v1735_v32 = vpop.f32.mrf.mxu0 }
  0xb7   : > { %v1790_v54 = vpop.f32.mrf.mxu3  ;;  %v401_v30 = vadd.f32 %v1689_v10, %v1735_v32 }
  0xb8   : > { %v1746_v37 = vpop.f32.mrf.mxu1 }
  0xb9   : > { %v474_v10 = vadd.f32 %v1746_v37, %v401_v30  ;;  %v981_v30 = vpop.permute.xlu0 %980 }
  0xbb   : > { %v423_v6 = vpop.f32.mrf.mxu2  ;;  %v497_v52 = vadd.f32 %v1790_v54, %v474_v10 }
  0xbc   : > { %v447_v25 = vadd.f32 %v1697_v15, %v423_v6  ;;  %v1175_v15 = vld [vmem:[%s1916_s4 + $0x128] sm:$0xff] }
  0xbd   : > { %940 = vmatpush.msrb.mxu2 %v1175_v15 }
  0xbe   : > { %v539_v50 = vpop.f32.mrf.mxu0 }
  0xbf   : > { %941 = vmatpush.msrb.mxu2 %v1174_v41 }
  0xc0   : > { %v639_v55 = vpop.f32.mrf.mxu1  ;;  %v516_v60 = vpop.f32.mrf.mxu3 }
  0xc1   : > { %v517_v8 = vadd.f32 %v516_v60, %v444_v12 }
  0xc3   : > { %v540_v18 = vadd.f32 %v539_v50, %v517_v8 }
  0xc6   : > { %v542_v2 = vpop.f32.mrf.mxu0 }
  0xc8   : > { %v1819_v3 = vpop.f32.mrf.mxu1  ;;  %v519_v21 = vpop.f32.mrf.mxu3 }
  0xc9   : > { %v520_v31 = vadd.f32 %v519_v21, %v447_v25 }
  0xcb   : > { %v543_v44 = vadd.f32 %v542_v2, %v520_v31 }
  0xd0   : > { %v685_v14 = vpop.f32.mrf.mxu1 }
  0xd2   : > { %v662_v11 = vpop.f32.mrf.mxu0 }
  0xd3   : > { %v686_v22 = vadd.f32 %v685_v14, %v662_v11 }
  0xd4   : > { %v616_v27 = vpop.f32.mrf.mxu2 }
  0xd5   : > { %v692_v33 = vadd.f32 %v686_v22, %v540_v18  ;;  %v640_v34 = vadd.f32 %v639_v55, %v616_v27 }
  0xd7   : > { %v702_v39 = vadd.f32 %v698_v23, %v692_v33  ;;  %v691_v40 = vadd.f32 %v640_v34, %v494_v24 }
  0xd8   : > { %v688_v42 = vpop.f32.mrf.mxu1 }
  0xd9   : > { %vm706_vm3 = vcmp.gt.f32.partialorder %v702_v39, 0.0  ;;  %v711_v32 = vmul.f32 %v1865_v38, %v702_v39  ;;  %v701_v43 = vadd.f32 %v697_v36, %v691_v40 }
  0xda   : > { %v665_v46 = vpop.f32.mrf.mxu0 }
  0xdb   : > { %vm705_vm5 = vcmp.gt.f32.partialorder %v701_v43, 0.0  ;;  %v710_v47 = vmul.f32 %v1865_v38, %v701_v43  ;;  %v689_v48 = vadd.f32 %v688_v42, %v665_v46  ;;  %v715_v49 = vsel %vm706_vm3, %v702_v39, %v711_v32  ;;  %v985_v42 = vpop.permute.xlu1 %984 }
  0xdc   : > { %v619_v50 = vpop.f32.mrf.mxu2  ;;  %v724_v51 = vrot.slane %v715_v49, 7 }
  0xdd   : > { %v714_v53 = vsel %vm705_vm5, %v701_v43, %v710_v47  ;;  %v694_v55 = vadd.f32 %v689_v48, %v543_v44  ;;  %v643_v37 = vadd.f32 %v1819_v3, %v619_v50  ;;  %v1207_v43 = vld [vmem:[%s1917_s5] ss:$0 sm:$0xff]  ;;  %v983_v44 = vpop.permute.xlu0 %982 }
  0xde   : > { %v723_v56 = vrot.slane %v714_v53, 7  ;;  %v735_v19 = vsel %vm722_vm4, 0.0, %v724_v51  ;;  %v989_v48 = vsel %vm988_vm9, %v981_v30, %v983_v44 }
  0xdf   : > { %v704_v57 = vadd.f32 %v698_v23, %v694_v55  ;;  %v693_v58 = vadd.f32 %v643_v37, %v497_v52  ;;  %1172 = vmatmul.msk.f32.vlgmr.msrb.gmra.mxu0 %vm352_vm1, %v735_v19  ;;  %v782_v20 = vrot.slane %v735_v19, 1  ;;  %v913_v17 = vrot.slane %v735_v19, 2 }
  0xe0   : > { %1171 = vmatmul.msk.f32.vlgmr.msra.gmra.mxu1 %vm1170_vm6, %v723_v56  ;;  %v734_v3 = vsel %vm722_vm4, 0.0, %v723_v56 }
  0xe1   : > { %v713_v35 = vmul.f32 %v1865_v38, %v704_v57  ;;  %v703_v59 = vadd.f32 %v697_v36, %v693_v58  ;;  %vm708_vm7 = vcmp.gt.f32.partialorder %v704_v57, 0.0  ;;  %v779_v6 = vrot.slane %v734_v3, 1 }
  0xe2   : > { %v910_v11 = vrot.slane %v734_v3, 2 }
  0xe3   : > { %v712_v54 = vmul.f32 %v1865_v38, %v703_v59  ;;  %v717_v62 = vsel %vm708_vm7, %v704_v57, %v713_v35  ;;  %vm707_vm8 = vcmp.gt.f32.partialorder %v703_v59, 0.0  ;;  %v987_v57 = vpop.permute.xlu1 %986 }
  0xe4   : > { %v727_v63 = vrot.slane %v717_v62, 7 }
  0xe5   : > { %v716_v0 = vsel %vm707_vm8, %v703_v59, %v712_v54  ;;  %v990_v54 = vsel %vm988_vm9, %v985_v42, %v987_v57 }
  0xe6   : > { %v728_v1 = vsel %vm722_vm4, %v724_v51, %v727_v63  ;;  %v725_v2 = vrot.slane %v716_v0, 7  ;;  %v737_v7 = vsel %vm722_vm4, %v727_v63, 0.0 }
  0xe7   : > { %v783_v60 = vrot.slane %v728_v1, 1  ;;  %1173 = vmatmul.msk.f32.gmra.mxu0 %vm352_vm1, %v728_v1  ;;  %v787_v45 = vrot.slane %v737_v7, 1  ;;  %v914_v16 = vrot.slane %v728_v1, 2  ;;  %v918_v23 = vrot.slane %v737_v7, 2 }
  0xe8   : > { %v726_v61 = vsel %vm722_vm4, %v723_v56, %v725_v2  ;;  %v736_v12 = vsel %vm722_vm4, %v725_v2, 0.0 }
  0xe9   : > { %v780_v4 = vrot.slane %v726_v61, 1  ;;  %864 = vmatmul.f32.gmra.mxu1 %v726_v61  ;;  %v784_v5 = vsel %vm339_vm0, %v782_v20, %v783_v60  ;;  %v785_v8 = vrot.slane %v736_v12, 1  ;;  %v788_v26 = vsel %vm339_vm0, %v783_v60, %v787_v45 }
  0xea   : > { %1168 = vmatmul.msk.f32.vlgmr.msra.gmra.mxu2 %vm352_vm1, %v784_v5  ;;  %v911_v14 = vrot.slane %v726_v61, 2  ;;  %v915_v21 = vsel %vm582_vm2, %v913_v17, %v914_v16  ;;  %v916_v22 = vrot.slane %v736_v12, 2  ;;  %v919_v25 = vsel %vm582_vm2, %v914_v16, %v918_v23 }
  0xeb   : > { %v781_v9 = vsel %vm339_vm0, %v779_v6, %v780_v4  ;;  %v786_v13 = vsel %vm339_vm0, %v780_v4, %v785_v8 }
  0xec   : > { %811 = vmatmul.f32.vlgmr.msrb.gmra.mxu3 %v781_v9  ;;  %v912_v18 = vsel %vm582_vm2, %v910_v11, %v911_v14  ;;  %v917_v24 = vsel %vm582_vm2, %v911_v14, %v916_v22 }
  0xf2   : > { %1169 = vmatmul.msk.f32.gmra.mxu2 %vm352_vm1, %v788_v26 }
  0xf4   : > { %814 = vmatmul.f32.gmra.mxu3 %v786_v13 }
  0xfa   : > { %942 = vmatmul.f32.vlgmr.msrb.gmra.mxu2 %v912_v18 }
  0xfc   : > { %1192 = vmatmul.msk.f32.vlgmr.msra.gmra.mxu3 %vm352_vm1, %v915_v21 }
 0x102   : > { %945 = vmatmul.f32.gmra.mxu2 %v917_v24 }
 0x104   : > { %1193 = vmatmul.msk.f32.gmra.mxu3 %vm352_vm1, %v919_v25 }
 0x15c   : > { %v885_v15 = vpop.f32.mrf.mxu0 }
 0x15d   : > { %v862_v36 = vpop.f32.mrf.mxu1 }
 0x164   : > { %v888_v51 = vpop.f32.mrf.mxu0 }
 0x166   : > { %v865_v47 = vpop.f32.mrf.mxu1 }
 0x16d   : > { %v835_v27 = vpop.f32.mrf.mxu2 }
 0x16f   : > { %v812_v28 = vpop.f32.mrf.mxu3 }
 0x170   : > { %v836_v34 = vadd.f32 %v835_v27, %v812_v28 }
 0x172   : > { %v863_v31 = vadd.f32 %v862_v36, %v836_v34 }
 0x174   : > { %v886_v10 = vadd.f32 %v885_v15, %v863_v31 }
 0x175   : > { %v838_v29 = vpop.f32.mrf.mxu2 }
 0x177   : > { %v815_v33 = vpop.f32.mrf.mxu3 }
 0x178   : > { %v839_v41 = vadd.f32 %v838_v29, %v815_v33 }
 0x17a   : > { %v866_v49 = vadd.f32 %v865_v47, %v839_v41 }
 0x17c   : > { %v889_v56 = vadd.f32 %v888_v51, %v866_v49 }
 0x17d   : > { %v943_v39 = vpop.f32.mrf.mxu2 }
 0x17f   : > { %v966_v40 = vpop.f32.mrf.mxu3 }
 0x180   : > { %v967_v32 = vadd.f32 %v966_v40, %v943_v39 }
 0x182   : > { %v972_v46 = vadd.f32 %v967_v32, %v886_v10 }
 0x184   : > { %v978_v50 = vadd.f32 %v1207_v43, %v972_v46 }
 0x185   : > { %v946_v53 = vpop.f32.mrf.mxu2 }
 0x186   : > { %v993_v52 = vadd.f32 %v989_v48, %v978_v50 }
 0x187   : > { %v969_v55 = vpop.f32.mrf.mxu3 }
 0x188   : > { %vm995_vm10 = vcmp.gt.f32.partialorder %v993_v52, 0.0  ;;  %v997_v37 = vmul.f32 %v993_v52, %v1865_v38  ;;  %v970_v19 = vadd.f32 %v969_v55, %v946_v53 }
 0x18a   : > { %v999_v58 = vsel %vm995_vm10, %v993_v52, %v997_v37  ;;  %v973_v35 = vadd.f32 %v970_v19, %v889_v56 }
 0x18b   : > { %1001 = vst [vmem:[%s252_s19] sm:$0xff] %v999_v58 }
 0x18c   : > { %v979_v59 = vadd.f32 %v1207_v43, %v973_v35 }
 0x18e   : > { %v994_v62 = vadd.f32 %v990_v54, %v979_v59 }
 0x190   : > { %vm996_vm11 = vcmp.gt.f32.partialorder %v994_v62, 0.0  ;;  %v998_v63 = vmul.f32 %v994_v62, %v1865_v38 }
 0x192   : > { %v1000_v0 = vsel %vm996_vm11, %v994_v62, %v998_v63 }
 0x193   : > { %1002 = vst [vmem:[%s252_s19 + $0x8] sm:$0xff] %v1000_v0 }
 0x194 PF: > { %s17_s23 = sadd.s32 1, %s1214_s23  }
 0x195   : > { %p14_p4 = scmp.ge.s32.totalorder %s17_s23, 4  }
 0x197   :  { %16 = sbr.rel (!%p14_p4) target bundleno = 2 (0x2), region = 78 }

</bundles_post_ra>
